<compile_context>
chip_gen: v5e
topology: v5e:2x2
jax: 0.10.0
libtpu: 0.0.40
codegen_flags: <defaults>
</compile_context>

<pallas_src>
import jax
import jax.numpy as jnp
from jax.experimental import pallas as pl
from jax.experimental.pallas import tpu as pltpu

IN_FEATURES = 10
OUT_FEATURES = 5
OUT_PADDED = 128  # lane-dense output width
B_PADDED = 8      # full sublane group


def _linear_add_relu_kernel(x_ref, w_ref, fb_ref, o_ref):
    # x_ref:  (B_PADDED, IN_FEATURES)      -- zero-padded rows
    # w_ref:  (IN_FEATURES, OUT_PADDED)    -- MXU-native (K, N), zero-padded cols
    # fb_ref: (1, OUT_PADDED)              -- (bias + other), zero-padded
    acc = jnp.dot(x_ref[...], w_ref[...], preferred_element_type=jnp.float32)
    o_ref[...] = jnp.maximum(acc + fb_ref[...], 0.0)


def prepare_params(weight, bias, other):
    """One-time host prep: fold bias+other, transpose + pad weight.

    weight: (OUT_FEATURES, IN_FEATURES) torch.nn.Linear layout
    bias, other: (OUT_FEATURES,)
    Returns (w_padded (IN, OUT_PADDED), fused_padded (1, OUT_PADDED)).
    """
    fused = (bias + other).astype(jnp.float32)
    fused_padded = (
        jnp.zeros((1, OUT_PADDED), jnp.float32).at[0, :OUT_FEATURES].set(fused)
    )
    w_padded = (
        jnp.zeros((IN_FEATURES, OUT_PADDED), jnp.float32)
        .at[:, :OUT_FEATURES]
        .set(weight.astype(jnp.float32).T)
    )
    return jax.block_until_ready(w_padded), jax.block_until_ready(fused_padded)


@jax.jit
def linear_add_relu(x, w_padded, fused_padded):
    """relu(x @ weight^T + bias + other) with pre-packed parameters."""
    B = x.shape[0]
    # Pad batch to a full sublane group (fuses into the call under jit).
    x_padded = (
        jnp.zeros((B_PADDED, IN_FEATURES), jnp.float32)
        .at[:B, :]
        .set(x.astype(jnp.float32))
    )

    out_padded = pl.pallas_call(
        _linear_add_relu_kernel,
        out_shape=jax.ShapeDtypeStruct((B_PADDED, OUT_PADDED), jnp.float32),
        in_specs=[
            pl.BlockSpec(memory_space=pltpu.VMEM),
            pl.BlockSpec(memory_space=pltpu.VMEM),
            pl.BlockSpec(memory_space=pltpu.VMEM),
        ],
        out_specs=pl.BlockSpec(memory_space=pltpu.VMEM),
    )(x_padded, w_padded, fused_padded)

    # Padded rows/cols are relu(0 + 0) == 0; slice them off (fused under jit).
    return out_padded[:B, :OUT_FEATURES]


if __name__ == "__main__":
    key = jax.random.PRNGKey(0)
    kx, kw, kb = jax.random.split(key, 3)

    # Deterministic parameter init (matches torch.nn.Linear(10, 5) shapes).
    bound = 1.0 / (IN_FEATURES ** 0.5)
    weight = jax.random.uniform(
        kw, (OUT_FEATURES, IN_FEATURES), jnp.float32, minval=-bound, maxval=bound
    )
    bias = jax.random.uniform(
        kb, (OUT_FEATURES,), jnp.float32, minval=-bound, maxval=bound
    )
    # other = torch.nn.Parameter(torch.zeros(5))
    other = jnp.zeros((OUT_FEATURES,), jnp.float32)

    # x = torch.randn(1, 10)
    x = jax.random.normal(kx, (1, IN_FEATURES), jnp.float32)

    # One-time parameter packing (hoisted out of the hot path).
    w_padded, fused_padded = prepare_params(weight, bias, other)

    out = linear_add_relu(x, w_padded, fused_padded)
    out = jax.block_until_ready(out)

    # Reference check in plain JAX.
    ref = jnp.maximum(x @ weight.T + bias + other, 0.0)
    assert out.shape == (1, OUT_FEATURES)
    assert jnp.allclose(out, ref, atol=1e-5, rtol=1e-5)

    print("KERNEL_OK")
</pallas_src>

<mosaic_0001>
module attributes {stable_mosaic.version = 11 : i64} {
  func.func @_linear_add_relu_kernel(%arg0: memref<8x10xf32, #tpu.memory_space<vmem>>, %arg1: memref<10x128xf32, #tpu.memory_space<vmem>>, %arg2: memref<1x128xf32, #tpu.memory_space<vmem>>, %arg3: memref<8x128xf32, #tpu.memory_space<vmem>>) attributes {dimension_semantics = [], scalar_prefetch = 0 : i64, scratch_operands = 0 : i64, tpu.core_type = #tpu.core_type<tc>} {
    %c0 = arith.constant 0 : index
    %c0_0 = arith.constant 0 : index
    %0 = vector.load %arg0[%c0, %c0_0] : memref<8x10xf32, #tpu.memory_space<vmem>>, vector<8x10xf32>
    %c0_1 = arith.constant 0 : index
    %c0_2 = arith.constant 0 : index
    %1 = vector.load %arg1[%c0_1, %c0_2] : memref<10x128xf32, #tpu.memory_space<vmem>>, vector<10x128xf32>
    %cst = arith.constant dense<0.000000e+00> : vector<8x128xf32>
    %2 = tpu.matmul %0, %1, %cst {dimension_numbers = #tpu.dot_dimension_numbers<[1], [0], [0], [1], [0, 0, 1, 1], [], []>} : vector<8x10xf32>, vector<10x128xf32>, vector<8x128xf32> -> vector<8x128xf32>
    %c0_3 = arith.constant 0 : index
    %c0_4 = arith.constant 0 : index
    %3 = vector.load %arg2[%c0_3, %c0_4] : memref<1x128xf32, #tpu.memory_space<vmem>>, vector<1x128xf32>
    %4 = vector.broadcast %3 : vector<1x128xf32> to vector<8x128xf32>
    %5 = arith.addf %2, %4 : vector<8x128xf32>
    %cst_5 = arith.constant 0.000000e+00 : f32
    %6 = vector.broadcast %cst_5 : f32 to vector<8x128xf32>
    %7 = arith.maximumf %5, %6 : vector<8x128xf32>
    %c0_6 = arith.constant 0 : index
    %c0_7 = arith.constant 0 : index
    %8 = vector.load %arg3[%c0_6, %c0_7] : memref<8x128xf32, #tpu.memory_space<vmem>>, vector<8x128xf32>
    tpu.vector_store %arg3[%c0_6, %c0_7], %7 {strides = array<i32>} : memref<8x128xf32, #tpu.memory_space<vmem>>, vector<8x128xf32>,
    return
  }
}

</mosaic_0001>

<bundles_post_ra>
// kernel: linear_add_relu.1
= control target key start
LH: loop header
LB: loop body
LE: loop exit
PB: predicated region body
PF: predicated region fallthrough
CT: control target
= control target key end

     0   :  { %8 = vsyncpa [#allocation3], 0  ;;  %s104_s15 = smov [#allocation2]   ;;  %s105_s17 = smov 128   ;;  %s139_s0 = inlined_call_operand.vmem [shape: f32[8,10], index: 0, kind: input, shape index: {}]   ;;  %s140_s1 = inlined_call_operand.hbm [shape: f32[10,128], index: 1, kind: input, shape index: {}]   ;;  %s141_s2 = inlined_call_operand.vmem [shape: f32[1,128], index: 2, kind: input, shape index: {}]   ;;  %s142_s3 = inlined_call_operand.vmem [shape: f32[8,128], index: 3, kind: output, shape index: {}]  }
   0x1   :  { %s15_s14 = sshll.u32 %s140_s1, 4  ;;  %s17_s16 = sshll.u32 %s104_s15, 4  ;;  %s16_s14 = int_to_ptr.hbm [resolvable:$true] %s15_s14  ;;  %s18_s16 = int_to_ptr.vmem [resolvable:$true] %s17_s16 }
   0x2   :  { %s106_s18 = smov 8  }
   0x3   :  { %23 = dma.hbm_to_vmem [thread:$0]  %s16_s14, 256, %s18_s16, [#allocation3], %s105_s17, %s105_s17, %s106_s18  }
   0x4   :  { %102 = dma.done.wait [#allocation3], 256  }
   0x5   :  { %103 = vsyncadd [#allocation3], 4294967040  ;;  %vm41_vm0 = vcmask 1041408   ;;  %v32_v0 = vld [vmem:[#allocation2 + $0x8] sm:$0x3]  ;;  %v31_v1 = vld [vmem:[#allocation2] sm:$0xff] }
   0x6   :  { %72 = vmatpush.msk.msra.mxu0 %vm41_vm0, %v32_v0  ;;  %v30_v2 = vld [vmem:[%s139_s0] sm:$0xff]  ;;  %vm37_vm1 = vcmask 80896  }
   0x7   :  { %v77_v3 = vld [vmem:[%s141_s2] ss:$0 sm:$0xff] }
   0x8   :  { %60 = vmatpush.msra.mxu0 %v31_v1 }
   0x9   :  { %73 = vmatmul.msk.f32.vlgmr.msra.gmra.mxu0 %vm37_vm1, %v30_v2 }
  0x86   :  { %v62_v4 = vpop.f32.mrf.mxu0 }
  0x87   :  { %v63_v5 = vadd.f32 %v77_v3, %v62_v4 }
  0x89   :  { %v65_v6 = vmax.f32 %v63_v5, 0.0 }
  0x8b   :  { %66 = vst [vmem:[%s142_s3] sm:$0xff] %v65_v6 }
  0x8c   :  { %71 = vsyncpa [#allocation3], 1 }

</bundles_post_ra>
